<compile_context>
chip_gen: v7x
topology: tpu7x:2x2x1
jax: 0.10.0
libtpu: 0.0.40
codegen_flags: <defaults>
</compile_context>

<pallas_src>
import functools

import jax
import jax.numpy as jnp
from jax.experimental import pallas as pl
from jax.experimental.pallas import tpu as pltpu


def _exp_mask_kernel(lens_ref, x_ref, o_ref, *, tile_t):
    """exp() one (1, tile_t, V) block, zeroing timesteps >= length[b]."""
    b = pl.program_id(0)
    t = pl.program_id(1)

    limit = lens_ref[b]                       # valid length of this sequence
    t_global = t * tile_t + jax.lax.broadcasted_iota(jnp.int32, x_ref.shape, 1)

    probs = jnp.exp(x_ref[...].astype(jnp.float32))
    o_ref[...] = jnp.where(t_global < limit, probs, 0.0).astype(o_ref.dtype)


def exp_probs_masked(log_probs, log_probs_length, *, tile_t=8192):
    """Pallas equivalent of `torch.exp(log_probs)` + per-sequence length masking.

    Args:
      log_probs: [B, T, V] float array of log-probabilities.
      log_probs_length: [B] integer valid lengths.
      tile_t: timesteps processed per grid step (rounded to a multiple of 8).

    Returns:
      [B, T, V] array (same dtype as input); exp(log_probs) for t < length[b],
      0.0 otherwise.  (The PyTorch module truly slices to [:length]; here
      invalid timesteps are zeroed so the output stays rectangular — consumers
      must use the lengths, exactly like the host CTC decoder does.)
    """
    B, T, V = log_probs.shape

    # Tile over T only: block second-to-last dim must be a multiple of 8 (or T);
    # last dim is the full vocab. Cap the tile so the double-buffered,
    # lane-padded VMEM footprint stays well under every generation's budget.
    lanes = pl.cdiv(V, 128) * 128
    vmem_cap_tt = max(8, (24 * 1024 * 1024) // (4 * lanes * 4))   # 2 in + 2 out bufs
    tt = min(int(tile_t), pl.cdiv(T, 8) * 8, vmem_cap_tt)
    tt = max(8, (tt // 8) * 8)
    grid_t = pl.cdiv(T, tt)

    lens = jnp.minimum(log_probs_length.astype(jnp.int32), jnp.int32(T))

    kernel = functools.partial(_exp_mask_kernel, tile_t=tt)

    grid_spec = pltpu.PrefetchScalarGridSpec(
        num_scalar_prefetch=1,            # lengths prefetched into SMEM
        grid=(B, grid_t),
        in_specs=[
            pl.BlockSpec((1, tt, V), lambda b, t, lens_ref: (b, t, 0)),
        ],
        out_specs=pl.BlockSpec((1, tt, V), lambda b, t, lens_ref: (b, t, 0)),
    )

    return pl.pallas_call(
        kernel,
        out_shape=jax.ShapeDtypeStruct((B, T, V), log_probs.dtype),
        grid_spec=grid_spec,
        compiler_params=pltpu.CompilerParams(
            dimension_semantics=("parallel", "parallel"),
            vmem_limit_bytes=32 * 1024 * 1024,
        ),
    )(lens, log_probs)


class BeamSearchDecoderWithLMPallas:
    """Mirror of the PyTorch module's config; forward runs the Pallas kernel
    for the exp/length-masking stage. The downstream beam search itself is not
    a tensor op (see TODO above)."""

    def __init__(self, vocab, beam_width, alpha, beta, lm_path=None,
                 num_cpus=1, cutoff_prob=1.0, cutoff_top_n=40):
        self.vocab = vocab
        self.beam_width = beam_width
        self.alpha = alpha
        self.beta = beta
        self.num_cpus = num_cpus
        self.cutoff_prob = cutoff_prob
        self.cutoff_top_n = cutoff_top_n

    def forward(self, log_probs, log_probs_length):
        # probs[b, t, :] == exp(log_probs[b, t, :]) for t < length[b], else 0
        return exp_probs_masked(log_probs, log_probs_length)


if __name__ == "__main__":
    # Small, module-consistent shapes: batch=2, seq=8, vocab = 28 chars + blank.
    B, T = 2, 8
    vocab = list("abcdefghijklmnopqrstuvwxyz '")   # 28 symbols
    V = len(vocab) + 1                             # + CTC blank = 29

    key = jax.random.PRNGKey(0)
    logits = jax.random.normal(key, (B, T, V), dtype=jnp.float32)
    log_probs = jax.nn.log_softmax(logits, axis=-1)
    log_probs_length = jnp.array([T, 5], dtype=jnp.int32)

    decoder = BeamSearchDecoderWithLMPallas(
        vocab, beam_width=4, alpha=1.0, beta=0.5, lm_path=None, num_cpus=1)

    probs = decoder.forward(log_probs, log_probs_length)
    probs = jax.block_until_ready(probs)

    # Reference check (plain JAX): exp + mask beyond valid length.
    t_idx = jnp.arange(T)[None, :, None]
    ref = jnp.where(t_idx < log_probs_length[:, None, None],
                    jnp.exp(log_probs), 0.0)
    assert probs.shape == (B, T, V)
    assert probs.dtype == log_probs.dtype
    assert jnp.allclose(probs, ref, atol=1e-6, rtol=1e-6)

    print("KERNEL_OK")
</pallas_src>

<mosaic_0001>
module attributes {stable_mosaic.version = 11 : i64} {
  func.func @_exp_mask_kernel(%arg0: i32, %arg1: i32, %arg2: memref<2xi32, #tpu.memory_space<smem>>, %arg3: memref<1x8x29xf32, #tpu.memory_space<vmem>>, %arg4: memref<1x8x29xf32, #tpu.memory_space<vmem>>) attributes {dimension_semantics = [#tpu.dimension_semantics<parallel>, #tpu.dimension_semantics<parallel>], iteration_bounds = array<i64: 2, 1>, scalar_prefetch = 1 : i64, scratch_operands = 0 : i64, tpu.core_type = #tpu.core_type<tc>, window_params = [{transform_indices = @transform_0, window_bounds = array<i64: 1, 8, 29>}, {transform_indices = @transform_1, window_bounds = array<i64: 1, 8, 29>}]} {
    %0 = arith.index_cast %arg0 : i32 to index
    %1 = memref.load %arg2[%0] : memref<2xi32, #tpu.memory_space<smem>>
    %c8_i32 = arith.constant 8 : i32
    %2 = arith.muli %arg1, %c8_i32 : i32
    %3 = tpu.iota {dimensions = array<i32: 1>} : vector<1x8x29xi32>
    %4 = vector.broadcast %2 : i32 to vector<1x8x29xi32>
    %5 = arith.addi %4, %3 : vector<1x8x29xi32>
    %c0 = arith.constant 0 : index
    %c0_0 = arith.constant 0 : index
    %c0_1 = arith.constant 0 : index
    %6 = vector.load %arg3[%c0, %c0_0, %c0_1] : memref<1x8x29xf32, #tpu.memory_space<vmem>>, vector<1x8x29xf32>
    %7 = math.exp %6 : vector<1x8x29xf32>
    %8 = vector.broadcast %1 : i32 to vector<1x8x29xi32>
    %9 = arith.cmpi slt, %5, %8 : vector<1x8x29xi32>
    %cst = arith.constant 0.000000e+00 : f32
    %10 = vector.broadcast %cst : f32 to vector<1x8x29xf32>
    %11 = arith.select %9, %7, %10 : vector<1x8x29xi1>, vector<1x8x29xf32>
    %c0_2 = arith.constant 0 : index
    %c0_3 = arith.constant 0 : index
    %c0_4 = arith.constant 0 : index
    %12 = vector.load %arg4[%c0_2, %c0_3, %c0_4] : memref<1x8x29xf32, #tpu.memory_space<vmem>>, vector<1x8x29xf32>
    tpu.vector_store %arg4[%c0_2, %c0_3, %c0_4], %11 {strides = array<i32>} : memref<1x8x29xf32, #tpu.memory_space<vmem>>, vector<1x8x29xf32>,
    return
  }
  func.func @transform_0(%arg0: i32, %arg1: i32, %arg2: memref<2xi32, #tpu.memory_space<smem>>) -> (i32, i32, i32) {
    %c0_i32 = arith.constant 0 : i32
    %c0_i32_0 = arith.constant 0 : i32
    return %arg0, %arg1, %c0_i32 : i32, i32, i32
  }
  func.func @transform_1(%arg0: i32, %arg1: i32, %arg2: memref<2xi32, #tpu.memory_space<smem>>) -> (i32, i32, i32) {
    %c0_i32 = arith.constant 0 : i32
    %c0_i32_0 = arith.constant 0 : i32
    return %arg0, %arg1, %c0_i32 : i32, i32, i32
  }
}

</mosaic_0001>

<bundles_post_ra>
// kernel: tpu_custom_call.1
= control target key start
LH: loop header
LB: loop body
LE: loop exit
PB: predicated region body
PF: predicated region fallthrough
CT: control target
= control target key end

     0   :  { %s670_s0 = inlined_call_operand.hbm [shape: s32[2], index: 0, kind: input, shape index: {}]   ;;  %s671_s1 = inlined_call_operand.hbm [shape: f32[2,8,29], index: 1, kind: input, shape index: {}]   ;;  %s672_s2 = inlined_call_operand.hbm [shape: f32[2,8,29], index: 2, kind: output, shape index: {}]  }
   0x1   :  { %s341_s11 = scalar_lea.hbm %s670_s0, 16 }
   0x2   :  { %p342_p0 = scmp.ne.s32.totalorder %s670_s0, %s341_s11  ;;  %p345_p1 = scmp.lt.u32.totalorder %s341_s11, %s670_s0 }
   0x4   :  { %p347_p2 = pnand %p345_p1, %p342_p0 }
   0x6   :  { %350 = shalt.err (!%p347_p2)  }
   0x7   :  { %s467_s16 = smov [#allocation3]  }
   0x8   :  { %8 = dma.hbm_to_smem %s670_s0, 16, %s467_s16, [#allocation2] }
   0x9   :  { %433 = dma.done.wait [#allocation2], 16 }
   0xa   :  { %434 = vsyncadd [#allocation2], 4294967280 }
   0xb   :  { %10 = sfence }
   0xc   :  { %11 = vsyncpa [#allocation5], 0 }
   0xd   :  { %13 = vsyncpa [#allocation5 + $0x1], 0 }
   0xe   :  { %14 = vsyncpa [#allocation6], 0 }
   0xf   :  { %16 = vsyncpa [#allocation6 + $0x1], 0  ;;  %s497_s19 = smov 0   ;;  %s499_s20 = smov 0  }
  0x10   :  { %s501_s21 = smov 0   ;;  %s503_s22 = smov 0  }
  0x11   :  { %s505_s23 = smov 0   ;;  %s507_s24 = smov 0  }
  0x12 LB: > { %s263_s0 = sadd.s32 4294967295, %s465_s24   ;;  %s264_s25 = sadd.s32 4294967294, %s465_s24   ;;  %s465_s24 = sphi %s507_s24, %s22_s24   ;;  %s461_s23 = sphi %s505_s23, %s688_s23   ;;  %s457_s22 = sphi %s503_s22, %s687_s22   ;;  %s453_s21 = sphi %s501_s21, %s686_s21   ;;  %s449_s20 = sphi %s499_s20, %s685_s20   ;;  %s445_s19 = sphi %s497_s19, %s684_s19  }
  0x13   : > { %s34_s26 = sadd.s32 1, %s461_s23  ;;  %s43_s27 = sadd.s32 1, %s453_s21 }
  0x14   : > { %p36_p3 = scmp.ge.s32.totalorder %s34_s26, 2  ;;  %p50_p4 = scmp.ne.s32.totalorder %s453_s21, %s449_s20 }
  0x15   : > { %p51_p5 = scmp.eq.s32.totalorder %s465_s24, 0  ;;  %p56_p6 = scmp.ne.s32.totalorder %s449_s20, %s445_s19 }
  0x16   : > { %s690_s26 = smov (%p36_p3, %s34_s26), 0  ;;  %p57_p8 = scmp.eq.s32.totalorder %s263_s0, 0 }
  0x17   : > { %p538_p7 = por %p51_p5, %p50_p4  ;;  %s38_s29 = ssub.s32 %s461_s23, %s690_s26 }
  0x18   : > { %p82_p9 = scmp.eq.s32.totalorder %s263_s0, 1  ;;  %p41_p10 = scmp.eq.s32.totalorder %s38_s29, 0 }
  0x19   : > { %p544_p11 = por %p57_p8, %p56_p6  ;;  %p88_p13 = scmp.eq.s32.totalorder %s264_s25, 1 }
  0x1a   : > { %p548_p12 = por %p82_p9, %p50_p4  ;;  %p288_p2 = scmp.lt.s32.totalorder %s465_s24, 2 }
  0x1b   : > { %s553_s4 = scalar_select %p41_p10, %s453_s21, %s43_s27  }
  0x1c   : > { %s676_s3 = scalar_select %p548_p12, 1, 0 }
  0x1d   : > { %p555_p0 = por %p88_p13, %p56_p6  ;;  %s108_s6 = sand.u32 1, %s453_s21  }
  0x1e   : > { %s267_s7 = sshll.u32 %s108_s6, 3  ;;  %s268_s8 = sshll.u32 %s461_s23, 7 }
  0x1f   : > { %s677_s5 = scalar_select %p555_p0, 1, 0 }
  0x20   : > { %s566_s11 = scalar_lea.hbm %s671_s1, %s268_s8  ;;  %s112_s12 = scalar_lea.vmem [#allocation4], %s267_s7 }
  0x21   : > { %s120_s13 = sshll.u32 %s112_s12, 4  ;;  %p572_p3 = pnand %p288_p2, %p538_p7  ;;  %s568_s13 = int_to_ptr.vmem [resolvable:$true] %s120_s13 }
  0x22   : > { %s109_s15 = scalar_lea.sflag [#allocation5], %s108_s6  ;;  %s351_s16 = scalar_lea.hbm %s566_s11, 128 }
  0x23   : > { %p352_p6 = scmp.ne.s32.totalorder %s566_s11, %s351_s16  ;;  %p353_p8 = pneg %p572_p3 }
  0x24   : > { %s356_s0 = scalar_lea.hbm %s671_s1, 256  ;;  %p357_p7 = scmp.lt.u32.totalorder %s566_s11, %s671_s1 }
  0x25   : > { %p354_p9 = pnand %p353_p8, %p352_p6  ;;  %p358_p13 = scmp.lt.u32.totalorder %s356_s0, %s351_s16 }
  0x26   : > { %p360_p1 = scmp.lt.u32.totalorder %s351_s16, %s566_s11 }
  0x27   : > { %p355_p10 = pneg %p354_p9  ;;  %p359_p2 = por %p358_p13, %p357_p7 }
  0x29   : > { %p361_p4 = por %p360_p1, %p359_p2 }
  0x2b   : > { %p362_p5 = pnand %p361_p4, %p355_p10 }
  0x2d   : > { %365 = shalt.err (!%p362_p5)
}
  0x2e   : > { %s366_s28 = scalar_lea.vmem %s568_s13, 128  ;;  %s468_s29 = smov [#allocation4]  }
  0x2f   : > { %p367_p6 = scmp.ne.s32.totalorder %s568_s13, %s366_s28  ;;  %s371_s6 = sshll.u32 %s468_s29, 4  ;;  %s372_s6 = int_to_ptr.vmem [resolvable:$false] %s371_s6 }
  0x30   : > { %s373_s7 = scalar_lea.vmem %s372_s6, 256  ;;  %p374_p12 = scmp.lt.s32.totalorder %s568_s13, %s372_s6 }
  0x31   : > { %p369_p9 = pnand %p367_p6, %p353_p8  ;;  %p375_p7 = scmp.lt.s32.totalorder %s373_s7, %s366_s28 }
  0x33   : > { %p370_p0 = pneg %p369_p9  ;;  %p376_p13 = por %p375_p7, %p374_p12 }
  0x35   : > { %p377_p1 = pnand %p376_p13, %p370_p0 }
  0x37   : > { %380 = shalt.err (!%p377_p1)
}
  0x38   : > { %283 = dma.hbm_to_vmem [thread:$0]  (!%p572_p3), %s566_s11, 128, %s568_s13, %s109_s15  }
  0x39   : > { %p679_p4 = scmp.lt.s32.totalorder %s465_s24, 3  ;;  %p680_p5 = scmp.ge.s32.totalorder %s465_s24, 1 }
  0x3b   : > { %p126_p8 = pnand %p680_p5, %p679_p4 }
  0x3c   : > { %s608_s8 = sand.u32 (!%p126_p8), 1, %s449_s20  }
  0x3d   : > { %129 = sbr.rel (%p126_p8) target bundleno = 98 (0x62), region = 24  ;;  %s270_s9 = sshll.u32 (!%p126_p8), %s608_s8, 3 }
  0x3e   : > { %s132_s10 = scalar_lea.sflag (!%p126_p8), [#allocation5], %s608_s8  ;;  %s135_s12 = scalar_lea.vmem (!%p126_p8), [#allocation4], %s270_s9 }
  0x44   : > { %436 = dma.done.wait (%p544_p11), %s132_s10, 128  }
  0x45   : > { %438 = vsyncadd (%p544_p11), %s132_s10, 4294967168  ;;  %s154_s11 = sld [smem:[#allocation3 + %s457_s22]]  ;;  %v160_v0 = vld [vmem:[%s135_s12] sm:$0xff]  ;;  %v156_v2 = vlaneseq  ;;  %s153_s13 = scalar_lea.vmem [#allocation7], %s270_s9  ;;  %vm166_vm1 = vcmask 236544  }
  0x46   : > { %v161_v1 = vmul.f32 1.442695, %v160_v0  ;;  %s183_s14 = sshll.u32 %s153_s13, 4  ;;  %s273_s15 = sshll.u32 %s457_s22, 7  ;;  %s618_s14 = int_to_ptr.vmem [resolvable:$true] %s183_s14 }
  0x47   : > { %v157_v3 = vshrl.u32 %v156_v2, 7  ;;  %s623_s17 = scalar_lea.hbm %s672_s2, %s273_s15  ;;  %s169_s18 = scalar_lea.sflag [#allocation6], %s608_s8 }
  0x48   : > { %339 = vpow2.f32 %v161_v1  ;;  %s381_s0 = scalar_lea.vmem %s618_s14, 128  ;;  %p681_p12 = scmp.ne.s32.totalorder %s676_s3, 0 }
  0x49   : > { %p382_p11 = scmp.ne.s32.totalorder %s618_s14, %s381_s0  ;;  %s469_s22 = smov [#allocation7]  }
  0x4a   : > { %s385_s25 = sshll.u32 %s469_s22, 4  ;;  %s386_s25 = int_to_ptr.vmem [resolvable:$false] %s385_s25 }
  0x4b   : > { %v163_v4 = vstv %s154_s11  ;;  %p383_p0 = pnand %p382_p11, %p681_p12  ;;  %s387_s27 = scalar_lea.vmem %s386_s25, 256 }
  0x4c   : > { %vm164_vm0 = vcmp.lt.s32.totalorder %v157_v3, %v163_v4  ;;  %p388_p10 = scmp.lt.s32.totalorder %s618_s14, %s386_s25  ;;  %p389_p2 = scmp.lt.s32.totalorder %s387_s27, %s381_s0 }
  0x4d   : > { %p384_p3 = pneg %p383_p0 }
  0x4e   : > { %p390_p6 = por %p389_p2, %p388_p10 }
  0x50   : > { %p391_p9 = pnand %p390_p6, %p384_p3 }
  0x52   : > { %v340_v5 = vpop.eup %339 }
  0x53   : > { %v165_v6 = vsel %vm164_vm0, %v340_v5, 0.0 }
  0x54   : > { %167 = vst.msk [vmem:[%s153_s13] sm:$0xff] %vm166_vm1, %v165_v6 }
  0x55   : > { %394 = shalt.err (!%p391_p9)
}
  0x56   : > { %s395_s28 = scalar_lea.hbm %s623_s17, 128  ;;  %s399_s7 = scalar_lea.hbm %s672_s2, 256 }
  0x57   : > { %p396_p7 = scmp.ne.s32.totalorder %s623_s17, %s395_s28  ;;  %p400_p4 = scmp.lt.u32.totalorder %s623_s17, %s672_s2 }
  0x58   : > { %p401_p5 = scmp.lt.u32.totalorder %s399_s7, %s395_s28  ;;  %p403_p11 = scmp.lt.u32.totalorder %s395_s28, %s623_s17 }
  0x59   : > { %p397_p13 = pnand %p396_p7, %p681_p12 }
  0x5a   : > { %p402_p8 = por %p401_p5, %p400_p4 }
  0x5b   : > { %p398_p1 = pneg %p397_p13 }
  0x5c   : > { %p404_p0 = por %p403_p11, %p402_p8 }
  0x5e   : > { %p405_p3 = pnand %p404_p0, %p398_p1 }
  0x60   : > { %408 = shalt.err (!%p405_p3)
}
  0x61   : > { %278 = dma.vmem_to_hbm [thread:$0]  (%p681_p12), %s618_s14, 128, %s623_s17, %s169_s18  }
  0x62 PF: > { %s195_s10 = sand.u32 1, %s445_s19   ;;  %p682_p10 = scmp.ne.s32.totalorder %s677_s5, 0 }
  0x63   : > { %p683_p2 = scmp.ge.s32.totalorder %s465_s24, 2  ;;  %s196_s12 = scalar_lea.sflag [#allocation6], %s195_s10 }
  0x65   : > { %p285_p6 = pnand %p683_p2, %p682_p10 }
  0x67   : > { %440 = dma.done.wait (!%p285_p6), %s196_s12, 128  }
  0x68   : > { %442 = vsyncadd (!%p285_p6), %s196_s12, 4294967168  ;;  %s22_s24 = sadd.s32 1, %s465_s24   ;;  %s684_s19 = smov %s449_s20 }
  0x69   : > { %p19_p9 = scmp.ge.s32.totalorder %s22_s24, 4   ;;  %s685_s20 = smov %s453_s21 }
  0x6a   : > { %s686_s21 = smov %s553_s4  ;;  %s687_s22 = smov %s461_s23 }
  0x6b   : > { %s688_s23 = smov %s690_s26  ;;  %21 = sbr.rel (!%p19_p9) target bundleno = 18 (0x12), region = 69 }
  0x72   :  { %201 = vsyncpa [#allocation5], 1 }
  0x73   :  { %203 = vsyncpa [#allocation5 + $0x1], 1 }
  0x74   :  { %204 = vsyncpa [#allocation6], 1 }
  0x75   :  { %206 = vsyncpa [#allocation6 + $0x1], 1 }

</bundles_post_ra>
